<compile_context>
chip_gen: v6e
topology: v6e:2x2x1
jax: 0.10.0
libtpu: 0.0.40
codegen_flags: <defaults>
</compile_context>

<pallas_src>
import jax
import jax.numpy as jnp
from jax.experimental import pallas as pl
from jax.experimental.pallas import tpu as pltpu


# --------------------------------------------------------------------------- #
# kernels
# --------------------------------------------------------------------------- #
def _encoder_kernel(
    x_ref,             # (TB, N, C)  f32   points for TB batch elements
    w1_ref, b1_ref,    # (C, 64)  f32, (1, 64)  f32   conv1 (BN folded), f32 path
    w2_ref, b2_ref,    # (64, 128) bf16, (1, 128) f32 conv2 (BN folded)
    w3_ref, b3_ref,    # (128, 256) bf16, (1, 256) f32 conv3 (BN folded)
    g_ref,             # (TB, 256) f32   pooled global features
):
    TB, N, C = x_ref.shape
    F3 = g_ref.shape[-1]

    # Fold the TB batch elements into the MXU M dimension: one per-point MLP.
    x = x_ref[...].reshape(TB * N, C)                                    # f32

    # conv1 kept in f32 (tiny K, protects the max-pool winner from bf16 noise)
    h = jnp.dot(x, w1_ref[...], preferred_element_type=jnp.float32) + b1_ref[...]
    h = jnp.maximum(h, 0.0)
    h = jnp.dot(h.astype(jnp.bfloat16), w2_ref[...],
                preferred_element_type=jnp.float32) + b2_ref[...]
    h = jnp.maximum(h, 0.0)
    h = jnp.dot(h.astype(jnp.bfloat16), w3_ref[...],
                preferred_element_type=jnp.float32) + b3_ref[...]
    # no ReLU on the last encoder layer (matches PointNetEncoder)

    # symmetric max pooling over the N points of each element -> (TB, 256)
    g_ref[...] = jnp.max(h.reshape(TB, N, F3), axis=1)


def _head_kernel(
    g_ref,             # (B, 256) f32 pooled features
    wf2_ref, bf2_ref,  # (256, 256) bf16, (1, 256) f32  fc2
    wf3_ref, bf3_ref,  # (256, Lp)  bf16, (1, Lp)  f32  fc3 (lane-padded)
    o_ref,             # (B, Lp) f32
):
    g = g_ref[...].astype(jnp.bfloat16)
    f = jnp.dot(g, wf2_ref[...], preferred_element_type=jnp.float32) + bf2_ref[...]
    f = jnp.maximum(f, 0.0)
    o_ref[...] = jnp.dot(f.astype(jnp.bfloat16), wf3_ref[...],
                         preferred_element_type=jnp.float32) + bf3_ref[...]


# --------------------------------------------------------------------------- #
# tiling / wrapper
# --------------------------------------------------------------------------- #
def _choose_tiling(B, N):
    """Pick batch tile TB and grid size G = B // TB.

    Targets TB*N ~ 2048 rows per step (MXU steady state; ~2 MB of f32 activations,
    comfortably inside the scoped-VMEM default on v5e/v6e/v7x).  When multiple
    steps are used, TB is a multiple of 8 (clean sublane output blocks) and G is
    kept even when possible so the 'parallel' axis shards across v7x's two TCs.
    """
    target_rows = 2048
    tb_cap = max(8, target_rows // max(N, 1))
    if B <= tb_cap:
        return B, 1                      # single step: no wasted overhead on 1-TC chips
    candidates = [tb for tb in range(8, tb_cap + 1, 8) if B % tb == 0]
    if not candidates:
        return B, 1                      # fall back to one step if B has no clean tile
    even = [tb for tb in candidates if (B // tb) % 2 == 0]
    tb = max(even) if even else max(candidates)
    return tb, B // tb


def mini_pointnet_forward(xyz, params):
    """xyz: (B, N, C) float32, channel-last. Returns (B, latent_dim) float32."""
    B, N, C = xyz.shape
    w1, b1 = params["w1"], params["b1"]
    w2, b2 = params["w2"], params["b2"]
    w3, b3 = params["w3"], params["b3"]
    wf2, bf2 = params["wf2"], params["bf2"]
    wf3, bf3 = params["wf3"], params["bf3"]
    F3 = w3.shape[1]                    # 256
    L = wf3.shape[1]

    # lane-dense head output: pad latent dim to 128 lanes, slice back afterwards
    Lp = max(128, L)
    if Lp != L:
        wf3 = jnp.pad(wf3, ((0, 0), (0, Lp - L)))
        bf3 = jnp.pad(bf3, ((0, 0), (0, Lp - L)))

    # bf16 matmul operands for the wide layers (f32 accumulation inside kernels);
    # conv1 stays f32, biases stay f32.  These are tiny one-time weight casts.
    bf16 = jnp.bfloat16
    w2b, w3b = w2.astype(bf16), w3.astype(bf16)
    wf2b, wf3b = wf2.astype(bf16), wf3.astype(bf16)

    TB, G = _choose_tiling(B, N)

    def full_spec(arr):
        # whole (small) parameter array as one block, independent of grid index
        nd = arr.ndim
        return pl.BlockSpec(arr.shape, lambda b, _nd=nd: (0,) * _nd)

    enc_flops = 2 * B * N * (C * 64 + 64 * 128 + 128 * F3)
    enc_bytes = (
        xyz.size * 4
        + (w1.size + b1.size + b2.size + b3.size) * 4
        + (w2b.size + w3b.size) * 2
        + B * F3 * 4
    )

    enc_kwargs = {}
    if G > 1:
        enc_kwargs["compiler_params"] = pltpu.CompilerParams(
            dimension_semantics=("parallel",))

    # ---- encoder: per-point MLP + max pool, tiled over the batch -------------
    g = pl.pallas_call(
        _encoder_kernel,
        out_shape=jax.ShapeDtypeStruct((B, F3), jnp.float32),
        grid_spec=pl.GridSpec(
            grid=(G,),
            in_specs=[
                pl.BlockSpec((TB, N, C), lambda b: (b, 0, 0)),
                full_spec(w1), full_spec(b1),
                full_spec(w2b), full_spec(b2),
                full_spec(w3b), full_spec(b3),
            ],
            out_specs=pl.BlockSpec((TB, F3), lambda b: (b, 0)),
        ),
        cost_estimate=pl.CostEstimate(
            flops=enc_flops, transcendentals=0, bytes_accessed=enc_bytes),
        **enc_kwargs,
    )(xyz, w1, b1, w2b, b2, w3b, b3)

    # ---- regression head: one tiny single-step call on pooled features -------
    out = pl.pallas_call(
        _head_kernel,
        out_shape=jax.ShapeDtypeStruct((B, Lp), jnp.float32),
        cost_estimate=pl.CostEstimate(
            flops=2 * B * (F3 * F3 + F3 * Lp),
            transcendentals=0,
            bytes_accessed=B * F3 * 4 + (wf2b.size + wf3b.size) * 2
            + (bf2.size + bf3.size) * 4 + B * Lp * 4),
    )(g, wf2b, bf2, wf3b, bf3)

    return out[:, :L]


# --------------------------------------------------------------------------- #
# parameters (eval-mode BN folded into the conv weights/biases)
# --------------------------------------------------------------------------- #
def _fold_bn(w, b, gamma, beta, mean, var, eps=1e-5):
    """Fold eval-mode BatchNorm1d into the preceding per-point linear layer."""
    scale = gamma / jnp.sqrt(var + eps)           # (out,)
    w_f = w * scale[None, :]                      # (in, out)
    b_f = (b - mean) * scale + beta               # (out,)
    return w_f, b_f


def init_params(key, channel=6, latent_dim=32):
    dims = [(channel, 64), (64, 128), (128, 256)]
    keys = jax.random.split(key, 32)
    ki = iter(range(32))

    def lin(cin, cout):
        w = jax.random.normal(keys[next(ki)], (cin, cout), jnp.float32) / jnp.sqrt(
            jnp.float32(cin))
        b = 0.1 * jax.random.normal(keys[next(ki)], (cout,), jnp.float32)
        return w, b

    params = {}
    for i, (cin, cout) in enumerate(dims, start=1):
        w, b = lin(cin, cout)
        gamma = 1.0 + 0.1 * jax.random.normal(keys[next(ki)], (cout,), jnp.float32)
        beta = 0.1 * jax.random.normal(keys[next(ki)], (cout,), jnp.float32)
        mean = 0.1 * jax.random.normal(keys[next(ki)], (cout,), jnp.float32)
        var = 1.0 + 0.1 * jnp.abs(jax.random.normal(keys[next(ki)], (cout,), jnp.float32))
        wf, bf = _fold_bn(w, b, gamma, beta, mean, var)
        params[f"w{i}"] = wf
        params[f"b{i}"] = bf.reshape(1, cout)

    wf2, bf2 = lin(256, 256)
    wf3, bf3 = lin(256, latent_dim)
    params["wf2"], params["bf2"] = wf2, bf2.reshape(1, 256)
    params["wf3"], params["bf3"] = wf3, bf3.reshape(1, latent_dim)
    return params


if __name__ == "__main__":
    key = jax.random.PRNGKey(0)
    k_x, k_p = jax.random.split(key)

    B, N, C = 2, 128, 6          # normal_channel=True -> channel = 6
    latent_dim = 32

    xyz = jax.random.normal(k_x, (B, N, C), jnp.float32)   # (B, N, C) as fed to mini_pointnet
    params = init_params(k_p, channel=C, latent_dim=latent_dim)

    out = mini_pointnet_forward(xyz, params)
    jax.block_until_ready(out)
    assert out.shape == (B, latent_dim)
    print("KERNEL_OK")
</pallas_src>

<mosaic_0001>
module attributes {stable_mosaic.version = 11 : i64} {
  func.func @_encoder_kernel(%arg0: i32, %arg1: memref<2x128x6xf32, #tpu.memory_space<vmem>>, %arg2: memref<6x64xf32, #tpu.memory_space<vmem>>, %arg3: memref<1x64xf32, #tpu.memory_space<vmem>>, %arg4: memref<64x128xbf16, #tpu.memory_space<vmem>>, %arg5: memref<1x128xf32, #tpu.memory_space<vmem>>, %arg6: memref<128x256xbf16, #tpu.memory_space<vmem>>, %arg7: memref<1x256xf32, #tpu.memory_space<vmem>>, %arg8: memref<2x256xf32, #tpu.memory_space<vmem>>) attributes {dimension_semantics = [#tpu.dimension_semantics<arbitrary>], iteration_bounds = array<i64: 1>, scalar_prefetch = 0 : i64, scratch_operands = 0 : i64, tpu.core_type = #tpu.core_type<tc>, window_params = [{transform_indices = @transform_0, window_bounds = array<i64: 2, 128, 6>}, {pipeline_mode = #tpu.pipeline_mode<synchronous>, transform_indices = @transform_1, window_bounds = array<i64: 6, 64>}, {pipeline_mode = #tpu.pipeline_mode<synchronous>, transform_indices = @transform_2, window_bounds = array<i64: 1, 64>}, {pipeline_mode = #tpu.pipeline_mode<synchronous>, transform_indices = @transform_3, window_bounds = array<i64: 64, 128>}, {pipeline_mode = #tpu.pipeline_mode<synchronous>, transform_indices = @transform_4, window_bounds = array<i64: 1, 128>}, {pipeline_mode = #tpu.pipeline_mode<synchronous>, transform_indices = @transform_5, window_bounds = array<i64: 128, 256>}, {pipeline_mode = #tpu.pipeline_mode<synchronous>, transform_indices = @transform_6, window_bounds = array<i64: 1, 256>}, {transform_indices = @transform_7, window_bounds = array<i64: 2, 256>}]} {
    %c0 = arith.constant 0 : index
    %c0_0 = arith.constant 0 : index
    %c0_1 = arith.constant 0 : index
    %0 = vector.load %arg1[%c0, %c0_0, %c0_1] : memref<2x128x6xf32, #tpu.memory_space<vmem>>, vector<2x128x6xf32>
    %1 = vector.shape_cast %0 : vector<2x128x6xf32> to vector<256x6xf32>
    %c0_2 = arith.constant 0 : index
    %c0_3 = arith.constant 0 : index
    %2 = vector.load %arg2[%c0_2, %c0_3] : memref<6x64xf32, #tpu.memory_space<vmem>>, vector<6x64xf32>
    %cst = arith.constant dense<0.000000e+00> : vector<256x64xf32>
    %3 = tpu.matmul %1, %2, %cst {dimension_numbers = #tpu.dot_dimension_numbers<[1], [0], [0], [1], [0, 0, 1, 1], [], []>} : vector<256x6xf32>, vector<6x64xf32>, vector<256x64xf32> -> vector<256x64xf32>
    %c0_4 = arith.constant 0 : index
    %c0_5 = arith.constant 0 : index
    %4 = vector.load %arg3[%c0_4, %c0_5] : memref<1x64xf32, #tpu.memory_space<vmem>>, vector<1x64xf32>
    %5 = vector.broadcast %4 : vector<1x64xf32> to vector<256x64xf32>
    %6 = arith.addf %3, %5 : vector<256x64xf32>
    %cst_6 = arith.constant 0.000000e+00 : f32
    %7 = vector.broadcast %cst_6 : f32 to vector<256x64xf32>
    %8 = arith.maximumf %6, %7 : vector<256x64xf32>
    %9 = arith.truncf %8 : vector<256x64xf32> to vector<256x64xbf16>
    %c0_7 = arith.constant 0 : index
    %c0_8 = arith.constant 0 : index
    %10 = vector.load %arg4[%c0_7, %c0_8] : memref<64x128xbf16, #tpu.memory_space<vmem>>, vector<64x128xbf16>
    %cst_9 = arith.constant dense<0.000000e+00> : vector<256x128xf32>
    %11 = tpu.matmul %9, %10, %cst_9 {dimension_numbers = #tpu.dot_dimension_numbers<[1], [0], [0], [1], [0, 0, 1, 1], [], []>} : vector<256x64xbf16>, vector<64x128xbf16>, vector<256x128xf32> -> vector<256x128xf32>
    %c0_10 = arith.constant 0 : index
    %c0_11 = arith.constant 0 : index
    %12 = vector.load %arg5[%c0_10, %c0_11] : memref<1x128xf32, #tpu.memory_space<vmem>>, vector<1x128xf32>
    %13 = vector.broadcast %12 : vector<1x128xf32> to vector<256x128xf32>
    %14 = arith.addf %11, %13 : vector<256x128xf32>
    %cst_12 = arith.constant 0.000000e+00 : f32
    %15 = vector.broadcast %cst_12 : f32 to vector<256x128xf32>
    %16 = arith.maximumf %14, %15 : vector<256x128xf32>
    %17 = arith.truncf %16 : vector<256x128xf32> to vector<256x128xbf16>
    %c0_13 = arith.constant 0 : index
    %c0_14 = arith.constant 0 : index
    %18 = vector.load %arg6[%c0_13, %c0_14] : memref<128x256xbf16, #tpu.memory_space<vmem>>, vector<128x256xbf16>
    %cst_15 = arith.constant dense<0.000000e+00> : vector<256x256xf32>
    %19 = tpu.matmul %17, %18, %cst_15 {dimension_numbers = #tpu.dot_dimension_numbers<[1], [0], [0], [1], [0, 0, 1, 1], [], []>} : vector<256x128xbf16>, vector<128x256xbf16>, vector<256x256xf32> -> vector<256x256xf32>
    %c0_16 = arith.constant 0 : index
    %c0_17 = arith.constant 0 : index
    %20 = vector.load %arg7[%c0_16, %c0_17] : memref<1x256xf32, #tpu.memory_space<vmem>>, vector<1x256xf32>
    %21 = vector.broadcast %20 : vector<1x256xf32> to vector<256x256xf32>
    %22 = arith.addf %19, %21 : vector<256x256xf32>
    %23 = vector.shape_cast %22 : vector<256x256xf32> to vector<2x128x256xf32>
    %cst_18 = arith.constant dense<0xFF800000> : vector<2x256xf32>
    %24 = vector.multi_reduction <maximumf>, %23, %cst_18 [1] : vector<2x128x256xf32> to vector<2x256xf32>
    %c0_19 = arith.constant 0 : index
    %c0_20 = arith.constant 0 : index
    %25 = vector.load %arg8[%c0_19, %c0_20] : memref<2x256xf32, #tpu.memory_space<vmem>>, vector<2x256xf32>
    tpu.vector_store %arg8[%c0_19, %c0_20], %24 {strides = array<i32>} : memref<2x256xf32, #tpu.memory_space<vmem>>, vector<2x256xf32>,
    return
  }
  func.func @transform_0(%arg0: i32) -> (i32, i32, i32) {
    %c0_i32 = arith.constant 0 : i32
    %c0_i32_0 = arith.constant 0 : i32
    %c0_i32_1 = arith.constant 0 : i32
    return %arg0, %c0_i32, %c0_i32_0 : i32, i32, i32
  }
  func.func @transform_1(%arg0: i32) -> (i32, i32) {
    %c0_i32 = arith.constant 0 : i32
    %c0_i32_0 = arith.constant 0 : i32
    %c0_i32_1 = arith.constant 0 : i32
    return %c0_i32, %c0_i32_0 : i32, i32
  }
  func.func @transform_2(%arg0: i32) -> (i32, i32) {
    %c0_i32 = arith.constant 0 : i32
    %c0_i32_0 = arith.constant 0 : i32
    %c0_i32_1 = arith.constant 0 : i32
    return %c0_i32, %c0_i32_0 : i32, i32
  }
  func.func @transform_3(%arg0: i32) -> (i32, i32) {
    %c0_i32 = arith.constant 0 : i32
    %c0_i32_0 = arith.constant 0 : i32
    %c0_i32_1 = arith.constant 0 : i32
    return %c0_i32, %c0_i32_0 : i32, i32
  }
  func.func @transform_4(%arg0: i32) -> (i32, i32) {
    %c0_i32 = arith.constant 0 : i32
    %c0_i32_0 = arith.constant 0 : i32
    %c0_i32_1 = arith.constant 0 : i32
    return %c0_i32, %c0_i32_0 : i32, i32
  }
  func.func @transform_5(%arg0: i32) -> (i32, i32) {
    %c0_i32 = arith.constant 0 : i32
    %c0_i32_0 = arith.constant 0 : i32
    %c0_i32_1 = arith.constant 0 : i32
    return %c0_i32, %c0_i32_0 : i32, i32
  }
  func.func @transform_6(%arg0: i32) -> (i32, i32) {
    %c0_i32 = arith.constant 0 : i32
    %c0_i32_0 = arith.constant 0 : i32
    %c0_i32_1 = arith.constant 0 : i32
    return %c0_i32, %c0_i32_0 : i32, i32
  }
  func.func @transform_7(%arg0: i32) -> (i32, i32) {
    %c0_i32 = arith.constant 0 : i32
    %c0_i32_0 = arith.constant 0 : i32
    return %arg0, %c0_i32 : i32, i32
  }
}

</mosaic_0001>

<bundles_post_ra>
// kernel: tpu_custom_call.1
= control target key start
LH: loop header
LB: loop body
LE: loop exit
PB: predicated region body
PF: predicated region fallthrough
CT: control target
= control target key end

     0   :  { %vm165_vm0 = vcmask 1045504   ;;  %vm68_vm1 = vcmask 48128   ;;  %s1974_s0 = inlined_call_operand.vmem [shape: f32[2,128,6], index: 0, kind: input, shape index: {}]   ;;  %s1975_s1 = inlined_call_operand.vmem [shape: f32[6,64], index: 1, kind: input, shape index: {}]   ;;  %s1976_s2 = inlined_call_operand.vmem [shape: f32[1,64], index: 2, kind: input, shape index: {}]   ;;  %s1977_s3 = inlined_call_operand.vmem [shape: bf16[64,128], index: 3, kind: input, shape index: {}]   ;;  %s1978_s4 = inlined_call_operand.vmem [shape: f32[1,128], index: 4, kind: input, shape index: {}]   ;;  %s1979_s5 = inlined_call_operand.vmem [shape: bf16[128,256], index: 5, kind: input, shape index: {}]   ;;  %s1980_s6 = inlined_call_operand.vmem [shape: f32[1,256], index: 6, kind: input, shape index: {}]   ;;  %s1981_s7 = inlined_call_operand.hbm [shape: f32[2,256], index: 7, kind: output, shape index: {}]  }
   0x1   :  { %v60_v0 = vld [vmem:[%s1975_s1] sm:$0x3f]  ;;  %v29_v2 = vld [vmem:[%s1974_s0 + $0x8] sm:$0xff]  ;;  %v30_v3 = vld [vmem:[%s1974_s0 + $0x10] sm:$0xff] }
   0x2   :  { %v28_v1 = vld [vmem:[%s1974_s0] sm:$0xff]  ;;  %1297 = vmatprep.subr.msk.mxu0 %vm165_vm0, %v60_v0  ;;  %v31_v4 = vld [vmem:[%s1974_s0 + $0x18] sm:$0xff]  ;;  %v33_v6 = vld [vmem:[%s1974_s0 + $0x28] sm:$0xff] }
   0x3   :  { %1299 = vmatprep.mubr.msk.f32.mxu0 %vm68_vm1, %v28_v1  ;;  %1298 = vmatpush3.msk.msra.mxu0 %vm165_vm0, %v60_v0  ;;  %v32_v5 = vld [vmem:[%s1974_s0 + $0x20] sm:$0xff]  ;;  %v34_v7 = vld [vmem:[%s1974_s0 + $0x30] sm:$0xff]  ;;  %v35_v8 = vld [vmem:[%s1974_s0 + $0x38] sm:$0xff] }
   0x4   :  { %1300 = vmatmul.mubr.msk.f32.vlgmr.msra.gmra.mxu0 %vm68_vm1, %v29_v2  ;;  %v36_v9 = vld [vmem:[%s1974_s0 + $0x40] sm:$0xff]  ;;  %v1406_v10 = vld [vmem:[%s1977_s3 + $0x18] sm:$0xff]   ;;  %v37_v11 = vld [vmem:[%s1974_s0 + $0x48] sm:$0xff] }
   0x5   :  { %1302 = vmatprep.mubr.msk.f32.mxu0 %vm68_vm1, %v30_v3  ;;  %1347 = vmatprep.subr.bf16.mxu1 %v1406_v10  ;;  %v38_v12 = vld [vmem:[%s1974_s0 + $0x50] sm:$0xff] }
   0x6   :  { %1348 = vmatpush3.bf16.msra.mxu1 %v1406_v10 }
   0x8   :  { %1303 = vmatmul.mubr.msk.f32.gmra.mxu0 %vm68_vm1, %v31_v4 }
   0x9   :  { %1305 = vmatprep.mubr.msk.f32.mxu0 %vm68_vm1, %v32_v5 }
   0xc   :  { %1306 = vmatmul.mubr.msk.f32.gmra.mxu0 %vm68_vm1, %v33_v6 }
   0xd   :  { %1308 = vmatprep.mubr.msk.f32.mxu0 %vm68_vm1, %v34_v7 }
  0x10   :  { %1309 = vmatmul.mubr.msk.f32.gmra.mxu0 %vm68_vm1, %v35_v8 }
  0x11   :  { %1311 = vmatprep.mubr.msk.f32.mxu0 %vm68_vm1, %v36_v9 }
  0x14   :  { %1312 = vmatmul.mubr.msk.f32.gmra.mxu0 %vm68_vm1, %v37_v11 }
  0x15   :  { %12 = vsyncpa [#allocation3], 0  ;;  %1314 = vmatprep.mubr.msk.f32.mxu0 %vm68_vm1, %v38_v12  ;;  %v39_v13 = vld [vmem:[%s1974_s0 + $0x58] sm:$0xff]  ;;  %v40_v14 = vld [vmem:[%s1974_s0 + $0x60] sm:$0xff]  ;;  %vm481_vm2 = vcmask 523264   ;;  %vm1149_vm3 = vcmask 1041409  }
  0x16   :  { %v41_v15 = vld [vmem:[%s1974_s0 + $0x68] sm:$0xff]  ;;  %v42_v16 = vld [vmem:[%s1974_s0 + $0x70] sm:$0xff]  ;;  %v43_v17 = vld [vmem:[%s1974_s0 + $0x78] sm:$0xff]  ;;  %vm1151_vm4 = vcmask 1043459   ;;  %vm1153_vm5 = vcmask 1045509   ;;  %vm1155_vm6 = vcmask 1047559  }
  0x17   :  { %v44_v18 = vld [vmem:[%s1974_s0 + $0x80] sm:$0xff]  ;;  %v45_v19 = vld [vmem:[%s1974_s0 + $0x88] sm:$0xff]  ;;  %v46_v20 = vld [vmem:[%s1974_s0 + $0x90] sm:$0xff] }
  0x18   :  { %1315 = vmatmul.mubr.msk.f32.gmra.mxu0 %vm68_vm1, %v39_v13  ;;  %v47_v21 = vld [vmem:[%s1974_s0 + $0x98] sm:$0xff]  ;;  %v48_v22 = vld [vmem:[%s1974_s0 + $0xa0] sm:$0xff]  ;;  %v49_v23 = vld [vmem:[%s1974_s0 + $0xa8] sm:$0xff] }
  0x19   :  { %1317 = vmatprep.mubr.msk.f32.mxu0 %vm68_vm1, %v40_v14  ;;  %v50_v24 = vld [vmem:[%s1974_s0 + $0xb0] sm:$0xff]  ;;  %v51_v25 = vld [vmem:[%s1974_s0 + $0xb8] sm:$0xff]  ;;  %v52_v26 = vld [vmem:[%s1974_s0 + $0xc0] sm:$0xff] }
  0x1a   :  { %v53_v27 = vld [vmem:[%s1974_s0 + $0xc8] sm:$0xff]  ;;  %v54_v28 = vld [vmem:[%s1974_s0 + $0xd0] sm:$0xff]  ;;  %v55_v29 = vld [vmem:[%s1974_s0 + $0xd8] sm:$0xff] }
  0x1b   :  { %v56_v30 = vld [vmem:[%s1974_s0 + $0xe0] sm:$0xff]  ;;  %v57_v31 = vld [vmem:[%s1974_s0 + $0xe8] sm:$0xff]  ;;  %v58_v32 = vld [vmem:[%s1974_s0 + $0xf0] sm:$0xff] }
  0x1c   :  { %1318 = vmatmul.mubr.msk.f32.gmra.mxu0 %vm68_vm1, %v41_v15  ;;  %v59_v33 = vld [vmem:[%s1974_s0 + $0xf8] sm:$0xff]  ;;  %v1407_v34 = vld [vmem:[%s1977_s3 + $0x10] sm:$0xff]   ;;  %v1408_v35 = vld [vmem:[%s1977_s3 + $0x8] sm:$0xff]  }
  0x1d   :  { %1320 = vmatprep.mubr.msk.f32.mxu0 %vm68_vm1, %v42_v16  ;;  %1349 = vmatprep.subr.bf16.mxu1 %v1407_v34  ;;  %v1409_v36 = vld [vmem:[%s1977_s3] sm:$0xff]   ;;  %v1410_v37 = vld [vmem:[%s1979_s5 + $0x70] ss:$8 sps:$4 sm:$0xff]   ;;  %v1412_v38 = vld [vmem:[%s1979_s5 + $0x74] ss:$8 sps:$4 sm:$0xff]  }
  0x1e   :  { %1350 = vmatpush3.bf16.msra.mxu1 %v1407_v34  ;;  %v1415_v39 = vld [vmem:[%s1979_s5 + $0x64] ss:$8 sps:$4 sm:$0xff]   ;;  %847 = vmatprep.subr.bf16.mxu0 %v1412_v38  ;;  %v1413_v40 = vld [vmem:[%s1979_s5 + $0x60] ss:$8 sps:$4 sm:$0xff]   ;;  %v1418_v41 = vld [vmem:[%s1979_s5 + $0x54] ss:$8 sps:$4 sm:$0xff]  }
  0x1f   :  { %1351 = vmatprep.subr.bf16.mxu1 %v1408_v35  ;;  %848 = vmatpush1.bf16.msra.mxu0 %v1410_v37  ;;  %v1660_v42 = vld [vmem:[%s1979_s5 + $0x50] ss:$8 sps:$4 sm:$0xff]   ;;  %v1665_v43 = vld [vmem:[%s1979_s5 + $0x44] ss:$8 sps:$4 sm:$0xff]   ;;  %v1671_v44 = vld [vmem:[%s1979_s5 + $0x40] ss:$8 sps:$4 sm:$0xff]  }
  0x20   :  { %1321 = vmatmul.mubr.msk.f32.gmra.mxu0 %vm68_vm1, %v43_v17  ;;  %849 = vmatprep.subr.bf16.mxu0 %v1415_v39  ;;  %v1677_v45 = vld [vmem:[%s1979_s5 + $0x34] ss:$8 sps:$4 sm:$0xff]   ;;  %v1683_v46 = vld [vmem:[%s1979_s5 + $0x30] ss:$8 sps:$4 sm:$0xff]   ;;  %v1689_v47 = vld [vmem:[%s1979_s5 + $0x24] ss:$8 sps:$4 sm:$0xff]  }
  0x21   :  { %1323 = vmatprep.mubr.msk.f32.mxu0 %vm68_vm1, %v44_v18  ;;  %v1695_v48 = vld [vmem:[%s1979_s5 + $0x20] ss:$8 sps:$4 sm:$0xff]   ;;  %v1701_v49 = vld [vmem:[%s1979_s5 + $0x14] ss:$8 sps:$4 sm:$0xff]   ;;  %v1707_v50 = vld [vmem:[%s1979_s5 + $0x10] ss:$8 sps:$4 sm:$0xff]  }
  0x22   :  { %1352 = vmatpush3.bf16.msra.mxu1 %v1408_v35  ;;  %v1714_v51 = vld [vmem:[%s1976_s2] ss:$0 sm:$0xff] }
  0x23   :  { %1353 = vmatprep.subr.bf16.mxu1 %v1409_v36  ;;  %850 = vmatpush1.bf16.msra.mxu0 %v1413_v40 }
  0x24   :  { %1324 = vmatmul.mubr.msk.f32.gmra.mxu0 %vm68_vm1, %v45_v19  ;;  %851 = vmatprep.subr.bf16.mxu0 %v1418_v41 }
  0x25   :  { %1326 = vmatprep.mubr.msk.f32.mxu0 %vm68_vm1, %v46_v20 }
  0x26   :  { %1354 = vmatpush3.bf16.msra.mxu1 %v1409_v36 }
  0x27   :  { %1387 = vmatprep.subr.bf16.mxu1 %v1412_v38  ;;  %852 = vmatpush1.bf16.msra.mxu0 %v1660_v42 }
  0x28   :  { %1327 = vmatmul.mubr.msk.f32.gmra.mxu0 %vm68_vm1, %v47_v21  ;;  %853 = vmatprep.subr.bf16.mxu0 %v1665_v43 }
  0x29   :  { %1329 = vmatprep.mubr.msk.f32.mxu0 %vm68_vm1, %v48_v22 }
  0x2b   :  { %854 = vmatpush1.bf16.msra.mxu0 %v1671_v44 }
  0x2c   :  { %1330 = vmatmul.mubr.msk.f32.gmra.mxu0 %vm68_vm1, %v49_v23  ;;  %855 = vmatprep.subr.bf16.mxu0 %v1677_v45 }
  0x2d   :  { %1332 = vmatprep.mubr.msk.f32.mxu0 %vm68_vm1, %v50_v24 }
  0x2f   :  { %856 = vmatpush1.bf16.msra.mxu0 %v1683_v46 }
  0x30   :  { %1333 = vmatmul.mubr.msk.f32.gmra.mxu0 %vm68_vm1, %v51_v25  ;;  %857 = vmatprep.subr.bf16.mxu0 %v1689_v47 }
  0x31   :  { %1335 = vmatprep.mubr.msk.f32.mxu0 %vm68_vm1, %v52_v26 }
  0x33   :  { %858 = vmatpush1.bf16.msra.mxu0 %v1695_v48 }
  0x34   :  { %1336 = vmatmul.mubr.msk.f32.gmra.mxu0 %vm68_vm1, %v53_v27  ;;  %859 = vmatprep.subr.bf16.mxu0 %v1701_v49 }
  0x35   :  { %1338 = vmatprep.mubr.msk.f32.mxu0 %vm68_vm1, %v54_v28 }
  0x37   :  { %860 = vmatpush1.bf16.msra.mxu0 %v1707_v50 }
  0x38   :  { %1339 = vmatmul.mubr.msk.f32.gmra.mxu0 %vm68_vm1, %v55_v29 }
  0x39   :  { %1341 = vmatprep.mubr.msk.f32.mxu0 %vm68_vm1, %v56_v30 }
  0x3c   :  { %1342 = vmatmul.mubr.msk.f32.gmra.mxu0 %vm68_vm1, %v57_v31 }
  0x3d   :  { %1344 = vmatprep.mubr.msk.f32.mxu0 %vm68_vm1, %v58_v32 }
  0x40   :  { %1345 = vmatmul.mubr.msk.f32.gmra.mxu0 %vm68_vm1, %v59_v33 }
  0xc4   :  { %v1301_v52 = vpop.f32.mrf.mxu0 }
  0xc5   :  { %v241_v53 = vadd.f32 %v1301_v52, %v1714_v51 }
  0xc6   :  { %v235_v54 = vpop.f32.mrf.mxu0 }
  0xc7   :  { %v236_v55 = vadd.f32 %v1714_v51, %v235_v54  ;;  %v395_v57 = vmax.f32 %v241_v53, 0.0 }
  0xc8   :  { %v1304_v56 = vpop.f32.mrf.mxu0 }
  0xc9   :  { %v394_v58 = vmax.f32 %v236_v55, 0.0  ;;  %v251_v59 = vadd.f32 %v1304_v56, %v1714_v51 }
  0xca   :  { %v245_v60 = vpop.f32.mrf.mxu0 }
  0xcb   :  { %v246_v61 = vadd.f32 %v1714_v51, %v245_v60  ;;  %v426_v62 = vpack.c.bf16 %v395_v57, %v394_v58  ;;  %v397_v0 = vmax.f32 %v251_v59, 0.0 }
  0xcc   :  { %v1307_v63 = vpop.f32.mrf.mxu0 }
  0xcd   :  { %v396_v1 = vmax.f32 %v246_v61, 0.0  ;;  %v261_v2 = vadd.f32 %v1307_v63, %v1714_v51  ;;  %1355 = vmatprep.mubr.msk.bf16.mxu1 %vm481_vm2, %v426_v62 }
  0xce   :  { %v255_v3 = vpop.f32.mrf.mxu0 }
  0xcf   :  { %v427_v4 = vpack.c.bf16 %v397_v0, %v396_v1  ;;  %v399_v5 = vmax.f32 %v261_v2, 0.0  ;;  %v256_v6 = vadd.f32 %v1714_v51, %v255_v3 }
  0xd0   :  { %v1310_v7 = vpop.f32.mrf.mxu0 }
  0xd1   :  { %v398_v8 = vmax.f32 %v256_v6, 0.0  ;;  %v271_v9 = vadd.f32 %v1310_v7, %v1714_v51  ;;  %1356 = vmatmul.mubr.msk.bf16.vlgmr.msra.gmra.mxu1 %vm481_vm2, %v427_v4 }
  0xd2   :  { %v265_v10 = vpop.f32.mrf.mxu0  ;;  %1395 = vmatpush1.bf16.msra.mxu1 %v1410_v37 }
  0xd3   :  { %v428_v11 = vpack.c.bf16 %v399_v5, %v398_v8  ;;  %v401_v12 = vmax.f32 %v271_v9, 0.0  ;;  %v266_v13 = vadd.f32 %v1714_v51, %v265_v10  ;;  %1388 = vmatprep.subr.bf16.mxu1 %v1415_v39 }
  0xd4   :  { %v1313_v14 = vpop.f32.mrf.mxu0 }
  0xd5   :  { %v400_v15 = vmax.f32 %v266_v13, 0.0  ;;  %v281_v16 = vadd.f32 %v1313_v14, %v1714_v51  ;;  %1359 = vmatprep.mubr.msk.bf16.mxu1 %vm481_vm2, %v428_v11 }
  0xd6   :  { %v275_v17 = vpop.f32.mrf.mxu0  ;;  %1396 = vmatpush1.bf16.msra.mxu1 %v1413_v40 }
  0xd7   :  { %v429_v18 = vpack.c.bf16 %v401_v12, %v400_v15  ;;  %v403_v19 = vmax.f32 %v281_v16, 0.0  ;;  %v276_v20 = vadd.f32 %v1714_v51, %v275_v17  ;;  %1389 = vmatprep.subr.bf16.mxu1 %v1418_v41 }
  0xd8   :  { %v1316_v21 = vpop.f32.mrf.mxu0 }
  0xd9   :  { %v402_v22 = vmax.f32 %v276_v20, 0.0  ;;  %v291_v23 = vadd.f32 %v1316_v21, %v1714_v51  ;;  %1360 = vmatmul.mubr.msk.bf16.gmra.mxu1 %vm481_vm2, %v429_v18 }
  0xda   :  { %v285_v24 = vpop.f32.mrf.mxu0  ;;  %1397 = vmatpush1.bf16.msra.mxu1 %v1660_v42 }
  0xdb   :  { %v430_v25 = vpack.c.bf16 %v403_v19, %v402_v22  ;;  %v405_v26 = vmax.f32 %v291_v23, 0.0  ;;  %v286_v27 = vadd.f32 %v1714_v51, %v285_v24  ;;  %1390 = vmatprep.subr.bf16.mxu1 %v1665_v43 }
  0xdc   :  { %v1319_v28 = vpop.f32.mrf.mxu0 }
  0xdd   :  { %v404_v29 = vmax.f32 %v286_v27, 0.0  ;;  %v301_v30 = vadd.f32 %v1319_v28, %v1714_v51  ;;  %1363 = vmatprep.mubr.msk.bf16.mxu1 %vm481_vm2, %v430_v25 }
  0xde   :  { %v295_v31 = vpop.f32.mrf.mxu0  ;;  %1398 = vmatpush1.bf16.msra.mxu1 %v1671_v44 }
  0xdf   :  { %v431_v32 = vpack.c.bf16 %v405_v26, %v404_v29  ;;  %v407_v33 = vmax.f32 %v301_v30, 0.0  ;;  %v296_v34 = vadd.f32 %v1714_v51, %v295_v31  ;;  %1391 = vmatprep.subr.bf16.mxu1 %v1677_v45 }
  0xe0   :  { %v1322_v35 = vpop.f32.mrf.mxu0 }
  0xe1   :  { %v406_v36 = vmax.f32 %v296_v34, 0.0  ;;  %v311_v37 = vadd.f32 %v1322_v35, %v1714_v51  ;;  %1364 = vmatmul.mubr.msk.bf16.gmra.mxu1 %vm481_vm2, %v431_v32 }
  0xe2   :  { %v305_v38 = vpop.f32.mrf.mxu0  ;;  %1399 = vmatpush1.bf16.msra.mxu1 %v1683_v46 }
  0xe3   :  { %v432_v39 = vpack.c.bf16 %v407_v33, %v406_v36  ;;  %v409_v40 = vmax.f32 %v311_v37, 0.0  ;;  %v306_v41 = vadd.f32 %v1714_v51, %v305_v38  ;;  %1392 = vmatprep.subr.bf16.mxu1 %v1689_v47  ;;  %v1433_v37 = vld [vmem:[%s1979_s5 + $0x4] ss:$8 sps:$4 sm:$0xff]   ;;  %v1431_v38 = vld [vmem:[%s1979_s5] ss:$8 sps:$4 sm:$0xff]  }
  0xe4   :  { %v1325_v42 = vpop.f32.mrf.mxu0  ;;  %861 = vmatprep.subr.bf16.mxu0 %v1433_v37 }
  0xe5   :  { %v408_v43 = vmax.f32 %v306_v41, 0.0  ;;  %v321_v44 = vadd.f32 %v1325_v42, %v1714_v51  ;;  %1367 = vmatprep.mubr.msk.bf16.mxu1 %vm481_vm2, %v432_v39  ;;  %862 = vmatpush1.bf16.msra.mxu0 %v1431_v38  ;;  %v1456_v39 = vmov 0   ;;  %v1784_v41 = vld [vmem:[%s1978_s4] ss:$0 sm:$0xff] }
  0xe6   :  { %v315_v45 = vpop.f32.mrf.mxu0  ;;  %1400 = vmatpush1.bf16.msra.mxu1 %v1695_v48  ;;  %879 = vmatprep.mubr.bf16.mxu0 %v1456_v39 }
  0xe7   :  { %v433_v52 = vpack.c.bf16 %v409_v40, %v408_v43  ;;  %v411_v53 = vmax.f32 %v321_v44, 0.0  ;;  %v316_v54 = vadd.f32 %v1714_v51, %v315_v45  ;;  %1393 = vmatprep.subr.bf16.mxu1 %v1701_v49 }
  0xe8   :  { %v1328_v46 = vpop.f32.mrf.mxu0 }
  0xe9   :  { %v410_v55 = vmax.f32 %v316_v54, 0.0  ;;  %v331_v56 = vadd.f32 %v1328_v46, %v1714_v51  ;;  %1368 = vmatmul.mubr.msk.bf16.gmra.mxu1 %vm481_vm2, %v433_v52 }
  0xea   :  { %v325_v47 = vpop.f32.mrf.mxu0  ;;  %1401 = vmatpush1.bf16.msra.mxu1 %v1707_v50 }
  0xeb   :  { %v434_v57 = vpack.c.bf16 %v411_v53, %v410_v55  ;;  %v413_v58 = vmax.f32 %v331_v56, 0.0  ;;  %v326_v59 = vadd.f32 %v1714_v51, %v325_v47  ;;  %1394 = vmatprep.subr.bf16.mxu1 %v1433_v37 }
  0xec   :  { %v1331_v48 = vpop.f32.mrf.mxu0 }
  0xed   :  { %v412_v60 = vmax.f32 %v326_v59, 0.0  ;;  %v341_v61 = vadd.f32 %v1331_v48, %v1714_v51  ;;  %1371 = vmatprep.mubr.msk.bf16.mxu1 %vm481_vm2, %v434_v57 }
  0xee   :  { %v335_v49 = vpop.f32.mrf.mxu0  ;;  %1402 = vmatpush1.bf16.msra.mxu1 %v1431_v38 }
  0xef   :  { %v435_v62 = vpack.c.bf16 %v413_v58, %v412_v60  ;;  %v415_v63 = vmax.f32 %v341_v61, 0.0  ;;  %v336_v0 = vadd.f32 %v1714_v51, %v335_v49 }
  0xf0   :  { %v1334_v1 = vpop.f32.mrf.mxu0 }
  0xf1   :  { %v414_v2 = vmax.f32 %v336_v0, 0.0  ;;  %v351_v3 = vadd.f32 %v1334_v1, %v1714_v51  ;;  %1372 = vmatmul.mubr.msk.bf16.gmra.mxu1 %vm481_vm2, %v435_v62 }
  0xf2   :  { %v345_v50 = vpop.f32.mrf.mxu0 }
  0xf3   :  { %v436_v4 = vpack.c.bf16 %v415_v63, %v414_v2  ;;  %v417_v5 = vmax.f32 %v351_v3, 0.0  ;;  %v346_v6 = vadd.f32 %v1714_v51, %v345_v50 }
  0xf4   :  { %v1337_v7 = vpop.f32.mrf.mxu0 }
  0xf5   :  { %v416_v8 = vmax.f32 %v346_v6, 0.0  ;;  %1375 = vmatprep.mubr.msk.bf16.mxu1 %vm481_vm2, %v436_v4  ;;  %v361_v9 = vadd.f32 %v1337_v7, %v1714_v51 }
  0xf6   :  { %v355_v10 = vpop.f32.mrf.mxu0 }
  0xf7   :  { %v437_v11 = vpack.c.bf16 %v417_v5, %v416_v8  ;;  %v419_v12 = vmax.f32 %v361_v9, 0.0  ;;  %v356_v13 = vadd.f32 %v1714_v51, %v355_v10 }
  0xf8   :  { %v1340_v14 = vpop.f32.mrf.mxu0 }
  0xf9   :  { %1376 = vmatmul.mubr.msk.bf16.gmra.mxu1 %vm481_vm2, %v437_v11  ;;  %v418_v15 = vmax.f32 %v356_v13, 0.0  ;;  %v371_v16 = vadd.f32 %v1340_v14, %v1714_v51 }
  0xfa   :  { %v365_v17 = vpop.f32.mrf.mxu0 }
  0xfb   :  { %v438_v18 = vpack.c.bf16 %v419_v12, %v418_v15  ;;  %v421_v19 = vmax.f32 %v371_v16, 0.0  ;;  %v366_v20 = vadd.f32 %v1714_v51, %v365_v17 }
  0xfc   :  { %v1343_v21 = vpop.f32.mrf.mxu0 }
  0xfd   :  { %v420_v22 = vmax.f32 %v366_v20, 0.0  ;;  %1379 = vmatprep.mubr.msk.bf16.mxu1 %vm481_vm2, %v438_v18  ;;  %v381_v23 = vadd.f32 %v1343_v21, %v1714_v51 }
  0xfe   :  { %v375_v24 = vpop.f32.mrf.mxu0 }
  0xff   :  { %v439_v25 = vpack.c.bf16 %v421_v19, %v420_v22  ;;  %v423_v26 = vmax.f32 %v381_v23, 0.0  ;;  %v376_v27 = vadd.f32 %v1714_v51, %v375_v24 }
 0x100   :  { %v1346_v28 = vpop.f32.mrf.mxu0 }
 0x101   :  { %1380 = vmatmul.mubr.msk.bf16.gmra.mxu1 %vm481_vm2, %v439_v25  ;;  %v422_v29 = vmax.f32 %v376_v27, 0.0  ;;  %v391_v30 = vadd.f32 %v1346_v28, %v1714_v51 }
 0x102   :  { %v385_v31 = vpop.f32.mrf.mxu0 }
 0x103   :  { %v440_v32 = vpack.c.bf16 %v423_v26, %v422_v29  ;;  %v425_v33 = vmax.f32 %v391_v30, 0.0  ;;  %v386_v34 = vadd.f32 %v1714_v51, %v385_v31 }
 0x105   :  { %v424_v35 = vmax.f32 %v386_v34, 0.0  ;;  %1383 = vmatprep.mubr.msk.bf16.mxu1 %vm481_vm2, %v440_v32 }
 0x107   :  { %v441_v36 = vpack.c.bf16 %v425_v33, %v424_v35 }
 0x109   :  { %1384 = vmatmul.mubr.msk.bf16.gmra.mxu1 %vm481_vm2, %v441_v36 }
 0x10a   :  { %969 = vmatprep.mubr.bf16.mxu1 %v1456_v39 }
 0x191   :  { %v1357_v51 = vpop.f32.mrf.mxu1 }
 0x192   :  { %v573_v57 = vadd.f32 %v1357_v51, %v1784_v41 }
 0x193   :  { %v564_v40 = vpop.f32.mrf.mxu1 }
 0x194   :  { %v565_v43 = vadd.f32 %v1784_v41, %v564_v40  ;;  %v693_v60 = vmax.f32 %v573_v57, 0.0 }
 0x195   :  { %v1358_v42 = vpop.f32.mrf.mxu1 }
 0x196   :  { %v691_v53 = vmax.f32 %v565_v43, 0.0  ;;  %v576_v55 = vadd.f32 %v1358_v42, %v1784_v41 }
 0x197   :  { %v567_v44 = vpop.f32.mrf.mxu1 }
 0x198   :  { %v568_v45 = vadd.f32 %v1784_v41, %v567_v44  ;;  %v694_v59 = vmax.f32 %v576_v55, 0.0 }
 0x199   :  { %v1361_v52 = vpop.f32.mrf.mxu1 }
 0x19a   :  { %v692_v54 = vmax.f32 %v568_v45, 0.0  ;;  %v724_v49 = vpack.c.bf16 %v694_v59, %v693_v60  ;;  %v589_v5 = vadd.f32 %v1361_v52, %v1784_v41 }
 0x19b   :  { %v580_v46 = vpop.f32.mrf.mxu1 }
 0x19c   :  { %v723_v56 = vpack.c.bf16 %v692_v54, %v691_v53  ;;  %v581_v62 = vadd.f32 %v1784_v41, %v580_v46  ;;  %v697_v10 = vmax.f32 %v589_v5, 0.0 }
 0x19d   :  { %v1362_v47 = vpop.f32.mrf.mxu1 }
 0x19e   :  { %880 = vmatmul.mubr.bf16.vlgmr.msra.gmra.mxu0 %v723_v56  ;;  %v695_v2 = vmax.f32 %v581_v62, 0.0  ;;  %v592_v6 = vadd.f32 %v1362_v47, %v1784_v41 }
 0x19f   :  { %v583_v58 = vpop.f32.mrf.mxu1  ;;  %889 = vmatprep.mubr.bf16.mxu0 %v1456_v39 }
 0x1a0   :  { %v584_v63 = vadd.f32 %v1784_v41, %v583_v58  ;;  %v698_v11 = vmax.f32 %v592_v6, 0.0 }
 0x1a1   :  { %v1365_v48 = vpop.f32.mrf.mxu1 }
 0x1a2   :  { %v696_v3 = vmax.f32 %v584_v63, 0.0  ;;  %v726_v15 = vpack.c.bf16 %v698_v11, %v697_v10  ;;  %v605_v27 = vadd.f32 %v1365_v48, %v1784_v41 }
 0x1a3   :  { %v596_v61 = vpop.f32.mrf.mxu1 }
 0x1a4   :  { %v725_v7 = vpack.c.bf16 %v696_v3, %v695_v2  ;;  %v597_v16 = vadd.f32 %v1784_v41, %v596_v61  ;;  %v701_v33 = vmax.f32 %v605_v27, 0.0  ;;  %v757_v27 = vlaneseq }
 0x1a5   :  { %v1366_v0 = vpop.f32.mrf.mxu1 }
 0x1a6   :  { %890 = vmatmul.mubr.bf16.gmra.mxu0 %v724_v49  ;;  %v699_v22 = vmax.f32 %v597_v16, 0.0  ;;  %v608_v28 = vadd.f32 %v1366_v0, %v1784_v41 }
 0x1a7   :  { %v599_v1 = vpop.f32.mrf.mxu1  ;;  %899 = vmatprep.mubr.bf16.mxu0 %v1456_v39 }
 0x1a8   :  { %v600_v17 = vadd.f32 %v1784_v41, %v599_v1  ;;  %v702_v34 = vmax.f32 %v608_v28, 0.0  ;;  %v1838_v28 = vshrl.u32 %v757_v27, 7 }
 0x1a9   :  { %v1794_v50 = vpop.f32.mrf.mxu1 }
 0x1aa   :  { %v700_v23 = vmax.f32 %v600_v17, 0.0  ;;  %v728_v40 = vpack.c.bf16 %v702_v34, %v701_v33  ;;  %v621_v48 = vadd.f32 %v1794_v50, %v1784_v41 }
 0x1ab   :  { %v612_v4 = vpop.f32.mrf.mxu1 }
 0x1ac   :  { %v727_v30 = vpack.c.bf16 %v700_v23, %v699_v22  ;;  %v613_v42 = vadd.f32 %v1784_v41, %v612_v4  ;;  %v705_v1 = vmax.f32 %v621_v48, 0.0 }
 0x1ad   :  { %v1370_v8 = vpop.f32.mrf.mxu1 }
 0x1ae   :  { %900 = vmatmul.mubr.bf16.gmra.mxu0 %v725_v7  ;;  %v703_v55 = vmax.f32 %v613_v42, 0.0  ;;  %v624_v60 = vadd.f32 %v1370_v8, %v1784_v41 }
 0x1af   :  { %v615_v9 = vpop.f32.mrf.mxu1  ;;  %909 = vmatprep.mubr.bf16.mxu0 %v1456_v39 }
 0x1b0   :  { %v616_v44 = vadd.f32 %v1784_v41, %v615_v9  ;;  %v706_v2 = vmax.f32 %v624_v60, 0.0 }
 0x1b1   :  { %v1373_v12 = vpop.f32.mrf.mxu1 }
 0x1b2   :  { %v637_v13 = vadd.f32 %v1373_v12, %v1784_v41  ;;  %v704_v56 = vmax.f32 %v616_v44, 0.0  ;;  %v730_v5 = vpack.c.bf16 %v706_v2, %v705_v1 }
 0x1b3   :  { %v1800_v14 = vpop.f32.mrf.mxu1 }
 0x1b4   :  { %v709_v19 = vmax.f32 %v637_v13, 0.0  ;;  %v729_v49 = vpack.c.bf16 %v704_v56, %v703_v55  ;;  %v629_v50 = vadd.f32 %v1784_v41, %v1800_v14 }
 0x1b5   :  { %v1374_v18 = vpop.f32.mrf.mxu1 }
 0x1b6   :  { %v640_v20 = vadd.f32 %v1374_v18, %v1784_v41  ;;  %910 = vmatmul.mubr.bf16.gmra.mxu0 %v726_v15  ;;  %v707_v11 = vmax.f32 %v629_v50, 0.0 }
 0x1b7   :  { %v631_v21 = vpop.f32.mrf.mxu1  ;;  %919 = vmatprep.mubr.bf16.mxu0 %v1456_v39 }
 0x1b8   :  { %v710_v24 = vmax.f32 %v640_v20, 0.0  ;;  %v632_v7 = vadd.f32 %v1784_v41, %v631_v21 }
 0x1b9   :  { %v1377_v25 = vpop.f32.mrf.mxu1 }
 0x1ba   :  { %v732_v26 = vpack.c.bf16 %v710_v24, %v709_v19  ;;  %v653_v45 = vadd.f32 %v1377_v25, %v1784_v41  ;;  %v708_v12 = vmax.f32 %v632_v7, 0.0 }
 0x1bb   :  { %v644_v29 = vpop.f32.mrf.mxu1 }
 0x1bc   :  { %v645_v31 = vadd.f32 %v1784_v41, %v644_v29  ;;  %970 = vmatmul.mubr.bf16.vlgmr.msra.gmra.mxu1 %v732_v26  ;;  %v713_v47 = vmax.f32 %v653_v45, 0.0  ;;  %v731_v17 = vpack.c.bf16 %v708_v12, %v707_v11  ;;  %v759_v29 = vsub.s32 0, %v1838_v28 }
 0x1bd   :  { %v1378_v32 = vpop.f32.mrf.mxu1  ;;  %979 = vmatprep.mubr.bf16.mxu1 %v1456_v39 }
 0x1be   :  { %920 = vmatmul.mubr.bf16.gmra.mxu0 %v727_v30  ;;  %v711_v36 = vmax.f32 %v645_v31, 0.0  ;;  %v656_v52 = vadd.f32 %v1378_v32, %v1784_v41  ;;  %v755_v30 = vld [vmem:[%s1980_s6] sm:$0x3]  ;;  %v763_v31 = vsub.s32 1, %v1838_v28  ;;  %s1458_s6 = smov [#allocation2]  }
 0x1bf   :  { %v647_v35 = vpop.f32.mrf.mxu1  ;;  %929 = vmatprep.mubr.bf16.mxu0 %v1456_v39  ;;  %s1165_s9 = sshll.u32 %s1458_s6, 4  ;;  %s1166_s9 = int_to_ptr.vmem [resolvable:$true] %s1165_s9 }
 0x1c0   :  { %v648_v37 = vadd.f32 %v1784_v41, %v647_v35  ;;  %v714_v57 = vmax.f32 %v656_v52, 0.0  ;;  %s1434_s10 = scalar_lea.vmem %s1166_s9, 64  ;;  %p1439_p1 = scmp.lt.s32.totalorder %s1166_s9, %s1166_s9 }
 0x1c1   :  { %v1381_v38 = vpop.f32.mrf.mxu1  ;;  %p1435_p0 = scmp.ne.s32.totalorder %s1166_s9, %s1434_s10  ;;  %p1440_p2 = scmp.lt.s32.totalorder %s1434_s10, %s1434_s10 }
 0x1c2   :  { %v712_v51 = vmax.f32 %v648_v37, 0.0  ;;  %v734_v62 = vpack.c.bf16 %v714_v57, %v713_v47  ;;  %v669_v8 = vadd.f32 %v1381_v38, %v1784_v41 }
 0x1c3   :  { %v660_v43 = vpop.f32.mrf.mxu1  ;;  %p1441_p3 = por %p1440_p2, %p1439_p1 }
 0x1c4   :  { %v733_v53 = vpack.c.bf16 %v712_v51, %v711_v36  ;;  %v661_v58 = vadd.f32 %v1784_v41, %v660_v43  ;;  %v717_v13 = vmax.f32 %v669_v8, 0.0 }
 0x1c5   :  { %v1382_v54 = vpop.f32.mrf.mxu1  ;;  %p1442_p4 = pnand %p1441_p3, %p1435_p0 }
 0x1c6   :  { %930 = vmatmul.mubr.bf16.gmra.mxu0 %v728_v40  ;;  %980 = vmatmul.mubr.bf16.gmra.mxu1 %v733_v53  ;;  %v715_v63 = vmax.f32 %v661_v58, 0.0  ;;  %v672_v9 = vadd.f32 %v1382_v54, %v1784_v41 }
 0x1c7   :  { %939 = vmatprep.mubr.bf16.mxu0 %v1456_v39  ;;  %989 = vmatprep.mubr.bf16.mxu1 %v1456_v39  ;;  %v663_v46 = vpop.f32.mrf.mxu1 }
 0x1c8   :  { %v664_v59 = vadd.f32 %v1784_v41, %v663_v46  ;;  %v718_v15 = vmax.f32 %v672_v9, 0.0 }
 0x1c9   :  { %v1385_v61 = vpop.f32.mrf.mxu1 }
 0x1ca   :  { %v716_v0 = vmax.f32 %v664_v59, 0.0  ;;  %v736_v18 = vpack.c.bf16 %v718_v15, %v717_v13  ;;  %v685_v22 = vadd.f32 %v1385_v61, %v1784_v41 }
 0x1cb   :  { %v676_v3 = vpop.f32.mrf.mxu1 }
 0x1cc   :  { %v735_v4 = vpack.c.bf16 %v716_v0, %v715_v63  ;;  %v677_v16 = vadd.f32 %v1784_v41, %v676_v3  ;;  %v721_v24 = vmax.f32 %v685_v22, 0.0 }
 0x1cd   :  { %v1386_v6 = vpop.f32.mrf.mxu1 }
 0x1ce   :  { %940 = vmatmul.mubr.bf16.gmra.mxu0 %v729_v49  ;;  %990 = vmatmul.mubr.bf16.gmra.mxu1 %v734_v62  ;;  %v719_v19 = vmax.f32 %v677_v16, 0.0  ;;  %v688_v23 = vadd.f32 %v1386_v6, %v1784_v41 }
 0x1cf   :  { %949 = vmatprep.mubr.bf16.mxu0 %v1456_v39  ;;  %999 = vmatprep.mubr.bf16.mxu1 %v1456_v39  ;;  %v679_v10 = vpop.f32.mrf.mxu1 }
 0x1d0   :  { %v680_v14 = vadd.f32 %v1784_v41, %v679_v10  ;;  %v722_v25 = vmax.f32 %v688_v23, 0.0  ;;  %v1845_v41 = vrot.slane %v755_v30, %v759_v29 }
 0x1d2   :  { %v720_v20 = vmax.f32 %v680_v14, 0.0  ;;  %v738_v26 = vpack.c.bf16 %v722_v25, %v721_v24 }
 0x1d4   :  { %v737_v21 = vpack.c.bf16 %v720_v20, %v719_v19 }
 0x1d6   :  { %950 = vmatmul.mubr.bf16.gmra.mxu0 %v730_v5  ;;  %1000 = vmatmul.mubr.bf16.gmra.mxu1 %v735_v4 }
 0x1d7   :  { %959 = vmatprep.mubr.bf16.mxu0 %v1456_v39  ;;  %1009 = vmatprep.mubr.bf16.mxu1 %v1456_v39 }
 0x1de   :  { %960 = vmatmul.mubr.bf16.gmra.mxu0 %v731_v17  ;;  %1010 = vmatmul.mubr.bf16.gmra.mxu1 %v736_v18 }
 0x1df   :  { %1019 = vmatprep.mubr.bf16.mxu1 %v1456_v39 }
 0x1e6   :  { %1020 = vmatmul.mubr.bf16.gmra.mxu1 %v737_v21 }
 0x1e7   :  { %1029 = vmatprep.mubr.bf16.mxu1 %v1456_v39  ;;  %v1847_v39 = vrot.slane %v755_v30, %v763_v31 }
 0x1ee   :  { %1030 = vmatmul.mubr.bf16.gmra.mxu1 %v738_v26 }
 0x25e   :  { %v881_v32 = vpop.f32.mrf.mxu0 }
 0x25f   :  { %v882_v35 = vadd.f32 %v881_v32, %v1845_v41 }
 0x260   :  { %v883_v33 = vpop.f32.mrf.mxu0 }
 0x261   :  { %v884_v38 = vadd.f32 %v883_v33, %v1847_v39 }
 0x262   :  { %v885_v34 = vpop.f32.mrf.mxu0 }
 0x263   :  { %v886_v36 = vadd.f32 %v885_v34, %v1845_v41 }
 0x264   :  { %v887_v37 = vpop.f32.mrf.mxu0 }
 0x265   :  { %v1040_v51 = vmax.f32 %v882_v35, %v886_v36  ;;  %v888_v40 = vadd.f32 %v887_v37, %v1847_v39 }
 0x266   :  { %v891_v42 = vpop.f32.mrf.mxu0 }
 0x267   :  { %v1061_v43 = vmax.f32 %v884_v38, %v888_v40  ;;  %v892_v44 = vadd.f32 %v891_v42, %v1845_v41 }
 0x268   :  { %v893_v45 = vpop.f32.mrf.mxu0 }
 0x269   :  { %v1041_v52 = vmax.f32 %v1040_v51, %v892_v44  ;;  %v894_v53 = vadd.f32 %v893_v45, %v1847_v39 }
 0x26a   :  { %v895_v54 = vpop.f32.mrf.mxu0 }
 0x26b   :  { %v1062_v46 = vmax.f32 %v1061_v43, %v894_v53  ;;  %v896_v55 = vadd.f32 %v895_v54, %v1845_v41 }
 0x26c   :  { %v897_v56 = vpop.f32.mrf.mxu0 }
 0x26d   :  { %v1042_v47 = vmax.f32 %v1041_v52, %v896_v55  ;;  %v898_v5 = vadd.f32 %v897_v56, %v1847_v39 }
 0x26e   :  { %v901_v57 = vpop.f32.mrf.mxu0 }
 0x26f   :  { %v902_v6 = vadd.f32 %v901_v57, %v1845_v41  ;;  %v1063_v12 = vmax.f32 %v1062_v46, %v898_v5 }
 0x270   :  { %v903_v58 = vpop.f32.mrf.mxu0 }
 0x271   :  { %v904_v8 = vadd.f32 %v903_v58, %v1847_v39  ;;  %v1043_v13 = vmax.f32 %v1042_v47, %v902_v6 }
 0x272   :  { %v905_v59 = vpop.f32.mrf.mxu0 }
 0x273   :  { %v906_v9 = vadd.f32 %v905_v59, %v1845_v41  ;;  %v1064_v18 = vmax.f32 %v1063_v12, %v904_v8 }
 0x274   :  { %v907_v48 = vpop.f32.mrf.mxu0 }
 0x275   :  { %v908_v15 = vadd.f32 %v907_v48, %v1847_v39  ;;  %v1044_v19 = vmax.f32 %v1043_v13, %v906_v9 }
 0x276   :  { %v911_v60 = vpop.f32.mrf.mxu0 }
 0x277   :  { %v912_v16 = vadd.f32 %v911_v60, %v1845_v41  ;;  %v1065_v24 = vmax.f32 %v1064_v18, %v908_v15 }
 0x278   :  { %v913_v61 = vpop.f32.mrf.mxu0 }
 0x279   :  { %v914_v20 = vadd.f32 %v913_v61, %v1847_v39  ;;  %v1045_v25 = vmax.f32 %v1044_v19, %v912_v16 }
 0x27a   :  { %v915_v49 = vpop.f32.mrf.mxu0 }
 0x27b   :  { %v916_v21 = vadd.f32 %v915_v49, %v1845_v41  ;;  %v1066_v31 = vmax.f32 %v1065_v24, %v914_v20 }
 0x27c   :  { %v917_v62 = vpop.f32.mrf.mxu0  ;;  %v1856_v63 = vpop.f32.mrf.mxu1 }
 0x27d   :  { %v918_v26 = vadd.f32 %v917_v62, %v1847_v39  ;;  %v1046_v32 = vmax.f32 %v1045_v25, %v916_v21 }
 0x27e   :  { %v921_v0 = vpop.f32.mrf.mxu0  ;;  %v1858_v1 = vpop.f32.mrf.mxu1 }
 0x27f   :  { %v922_v27 = vadd.f32 %v921_v0, %v1845_v41  ;;  %v1067_v37 = vmax.f32 %v1066_v31, %v918_v26 }
 0x280   :  { %v923_v2 = vpop.f32.mrf.mxu0  ;;  %v1860_v3 = vpop.f32.mrf.mxu1 }
 0x281   :  { %v924_v33 = vadd.f32 %v923_v2, %v1847_v39  ;;  %v1047_v38 = vmax.f32 %v1046_v32, %v922_v27 }
 0x282   :  { %v925_v4 = vpop.f32.mrf.mxu0  ;;  %v1864_v50 = vpop.f32.mrf.mxu1 }
 0x283   :  { %v926_v34 = vadd.f32 %v925_v4, %v1845_v41  ;;  %v1068_v44 = vmax.f32 %v1067_v37, %v924_v33 }
 0x284   :  { %v927_v7 = vpop.f32.mrf.mxu0 }
 0x285   :  { %v928_v51 = vadd.f32 %v927_v7, %v1847_v39  ;;  %v1048_v45 = vmax.f32 %v1047_v38, %v926_v34 }
 0x286   :  { %v931_v10 = vpop.f32.mrf.mxu0  ;;  %v1868_v11 = vpop.f32.mrf.mxu1 }
 0x287   :  { %v932_v40 = vadd.f32 %v931_v10, %v1845_v41  ;;  %v1069_v55 = vmax.f32 %v1068_v44, %v928_v51  ;;  %v972_v44 = vadd.f32 %v1856_v63, %v1845_v41 }
 0x288   :  { %v933_v14 = vpop.f32.mrf.mxu0  ;;  %v1872_v17 = vpop.f32.mrf.mxu1 }
 0x289   :  { %v934_v52 = vadd.f32 %v933_v14, %v1847_v39  ;;  %v1049_v56 = vmax.f32 %v1048_v45, %v932_v40 }
 0x28a   :  { %v935_v22 = vpop.f32.mrf.mxu0  ;;  %v1876_v23 = vpop.f32.mrf.mxu1 }
 0x28b   :  { %v936_v53 = vadd.f32 %v935_v22, %v1845_v41  ;;  %v1070_v48 = vmax.f32 %v1069_v55, %v934_v52 }
 0x28c   :  { %v937_v29 = vpop.f32.mrf.mxu0  ;;  %v1880_v30 = vpop.f32.mrf.mxu1 }
 0x28d   :  { %v938_v47 = vadd.f32 %v937_v29, %v1847_v39  ;;  %v1050_v60 = vmax.f32 %v1049_v56, %v936_v53 }
 0x28e   :  { %v941_v35 = vpop.f32.mrf.mxu0  ;;  %v1884_v36 = vpop.f32.mrf.mxu1 }
 0x28f   :  { %v942_v57 = vadd.f32 %v941_v35, %v1845_v41  ;;  %v1071_v2 = vmax.f32 %v1070_v48, %v938_v47 }
 0x290   :  { %v943_v42 = vpop.f32.mrf.mxu0  ;;  %v1888_v43 = vpop.f32.mrf.mxu1 }
 0x291   :  { %v944_v61 = vadd.f32 %v943_v42, %v1847_v39  ;;  %v1051_v4 = vmax.f32 %v1050_v60, %v942_v57  ;;  %v974_v57 = vadd.f32 %v1858_v1, %v1847_v39  ;;  %v984_v1 = vadd.f32 %v1872_v17, %v1847_v39 }
 0x292   :  { %v945_v54 = vpop.f32.mrf.mxu0  ;;  %v1892_v46 = vpop.f32.mrf.mxu1 }
 0x293   :  { %v946_v49 = vadd.f32 %v945_v54, %v1845_v41  ;;  %v1072_v9 = vmax.f32 %v1071_v2, %v944_v61 }
 0x294   :  { %v947_v58 = vpop.f32.mrf.mxu0  ;;  %v1896_v59 = vpop.f32.mrf.mxu1 }
 0x295   :  { %v948_v5 = vadd.f32 %v947_v58, %v1847_v39  ;;  %v1052_v10 = vmax.f32 %v1051_v4, %v946_v49  ;;  %v976_v58 = vadd.f32 %v1860_v3, %v1845_v41  ;;  %v982_v4 = vadd.f32 %v1868_v11, %v1845_v41 }
 0x296   :  { %v951_v62 = vpop.f32.mrf.mxu0  ;;  %v1900_v0 = vpop.f32.mrf.mxu1  ;;  %v986_v3 = vadd.f32 %v1876_v23, %v1845_v41  ;;  %v992_v11 = vadd.f32 %v1884_v36, %v1845_v41  ;;  %v994_v23 = vadd.f32 %v1888_v43, %v1847_v39 }
 0x297   :  { %v952_v6 = vadd.f32 %v951_v62, %v1845_v41  ;;  %v1073_v16 = vmax.f32 %v1072_v9, %v948_v5  ;;  %v978_v62 = vadd.f32 %v1864_v50, %v1847_v39  ;;  %v1002_v36 = vadd.f32 %v1900_v0, %v1845_v41 }
 0x298   :  { %v953_v7 = vpop.f32.mrf.mxu0  ;;  %v1904_v8 = vpop.f32.mrf.mxu1 }
 0x299   :  { %v954_v12 = vadd.f32 %v953_v7, %v1847_v39  ;;  %v1053_v14 = vmax.f32 %v1052_v10, %v952_v6 }
 0x29a   :  { %v955_v13 = vpop.f32.mrf.mxu0  ;;  %v1907_v15 = vpop.f32.mrf.mxu1 }
 0x29b   :  { %v956_v18 = vadd.f32 %v955_v13, %v1845_v41  ;;  %v1074_v21 = vmax.f32 %v1073_v16, %v954_v12  ;;  %v988_v16 = vadd.f32 %v1880_v30, %v1847_v39  ;;  %v998_v30 = vadd.f32 %v1896_v59, %v1847_v39 }
 0x29c   :  { %v957_v19 = vpop.f32.mrf.mxu0  ;;  %v1910_v20 = vpop.f32.mrf.mxu1  ;;  %v1006_v43 = vadd.f32 %v1907_v15, %v1845_v41 }
 0x29d   :  { %v1054_v22 = vmax.f32 %v1053_v14, %v956_v18  ;;  %v958_v24 = vadd.f32 %v957_v19, %v1847_v39 }
 0x29e   :  { %v961_v25 = vpop.f32.mrf.mxu0  ;;  %v1011_v26 = vpop.f32.mrf.mxu1 }
 0x29f   :  { %v1055_v27 = vrot.slane %v1054_v22, 4  ;;  %v1075_v29 = vmax.f32 %v1074_v21, %v958_v24  ;;  %v962_v40 = vadd.f32 %v961_v25, %v1845_v41  ;;  %v996_v21 = vadd.f32 %v1892_v46, %v1845_v41 }
 0x2a0   :  { %v963_v31 = vpop.f32.mrf.mxu0  ;;  %v1013_v32 = vpop.f32.mrf.mxu1  ;;  %v1008_v46 = vadd.f32 %v1910_v20, %v1847_v39 }
 0x2a1   :  { %v1056_v33 = vmax.f32 %v1054_v22, %v1055_v27  ;;  %v1076_v34 = vrot.slane %v1075_v29, 4  ;;  %v964_v45 = vadd.f32 %v963_v31, %v1847_v39  ;;  %v1004_v31 = vadd.f32 %v1904_v8, %v1847_v39 }
 0x2a2   :  { %v965_v35 = vpop.f32.mrf.mxu0  ;;  %v1015_v37 = vpop.f32.mrf.mxu1  ;;  %v1014_v0 = vadd.f32 %v1013_v32, %v1847_v39 }
 0x2a3   :  { %v1057_v38 = vrot.slane %v1056_v33, 2  ;;  %v1077_v51 = vmax.f32 %v1075_v29, %v1076_v34  ;;  %v966_v42 = vadd.f32 %v965_v35, %v1845_v41  ;;  %v1012_v35 = vadd.f32 %v1011_v26, %v1845_v41 }
 0x2a4   :  { %v967_v52 = vpop.f32.mrf.mxu0  ;;  %v1017_v53 = vpop.f32.mrf.mxu1 }
 0x2a5   :  { %v1058_v54 = vmax.f32 %v1056_v33, %v1057_v38  ;;  %v1078_v55 = vrot.slane %v1077_v51, 2  ;;  %v1082_v56 = vmax.f32 %v962_v40, %v966_v42  ;;  %v968_v47 = vadd.f32 %v967_v52, %v1847_v39 }
 0x2a6   :  { %v1021_v48 = vpop.f32.mrf.mxu1  ;;  %v1016_v40 = vadd.f32 %v1015_v37, %v1845_v41 }
 0x2a7   :  { %v1059_v60 = vrot.slane %v1058_v54, 1  ;;  %v1079_v61 = vmax.f32 %v1077_v51, %v1078_v55  ;;  %v1083_v49 = vmax.f32 %v1082_v56, %v972_v44  ;;  %v1103_v63 = vmax.f32 %v964_v45, %v968_v47 }
 0x2a8   :  { %v1023_v2 = vpop.f32.mrf.mxu1  ;;  %v1018_v45 = vadd.f32 %v1017_v53, %v1847_v39  ;;  %v1022_v52 = vadd.f32 %v1021_v48, %v1845_v41 }
 0x2a9   :  { %v1080_v5 = vrot.slane %v1079_v61, 1  ;;  %v1084_v6 = vmax.f32 %v1083_v49, %v976_v58  ;;  %v1104_v7 = vmax.f32 %v1103_v63, %v974_v57  ;;  %v1931_v10 = vmax.f32 %v1058_v54, %v1059_v60 }
 0x2aa   :  { %v1025_v9 = vpop.f32.mrf.mxu1  ;;  %v1024_v26 = vadd.f32 %v1023_v2, %v1847_v39 }
 0x2ab   :  { %v1933_v12 = vmax.f32 %v1079_v61, %v1080_v5  ;;  %v1085_v13 = vmax.f32 %v1084_v6, %v982_v4  ;;  %v1105_v50 = vmax.f32 %v1104_v7, %v978_v62  ;;  %v1026_v56 = vadd.f32 %v1025_v9, %v1845_v41 }
 0x2ac   :  { %v1027_v19 = vpop.f32.mrf.mxu1 }
 0x2ad   :  { %v1128_v14 = vcombine.low %v1931_v10, %v1933_v12  ;;  %v1086_v17 = vmax.f32 %v1085_v13, %v986_v3  ;;  %v1106_v18 = vmax.f32 %v1105_v50, %v984_v1  ;;  %v1028_v32 = vadd.f32 %v1027_v19, %v1847_v39 }
 0x2ae   :  { %v1031_v29 = vpop.f32.mrf.mxu1  ;;  %v1457_v3 = vmov 1983009808  }
 0x2af   :  { %v1087_v22 = vmax.f32 %v1086_v17, %v992_v11  ;;  %v1107_v24 = vmax.f32 %v1106_v18, %v988_v16  ;;  %v1032_v37 = vadd.f32 %v1031_v29, %v1845_v41  ;;  %v1130_v9 = vunpack.c.l.s4 %v1457_v3 }
 0x2b0   :  { %v1033_v51 = vpop.f32.mrf.mxu1 }
 0x2b1   :  { %v1088_v25 = vmax.f32 %v1087_v22, %v996_v21  ;;  %v1108_v27 = vmax.f32 %v1107_v24, %v994_v23  ;;  %v1034_v53 = vadd.f32 %v1033_v51, %v1847_v39  ;;  %v1131_v17 = vunpack.c.0.s8 %v1130_v9 }
 0x2b2   :  { %v1035_v54 = vpop.f32.mrf.mxu1 }
 0x2b3   :  { %v1089_v33 = vmax.f32 %v1088_v25, %v1002_v36  ;;  %v1109_v34 = vmax.f32 %v1108_v27, %v998_v30  ;;  %v1036_v48 = vadd.f32 %v1035_v54, %v1845_v41  ;;  %v1134_v23 = vsub.s32 %v1131_v17, %v1838_v28 }
 0x2b4   :  { %v1037_v58 = vpop.f32.mrf.mxu1 }
 0x2b5   :  { %v1090_v59 = vmax.f32 %v1089_v33, %v1006_v43  ;;  %v1110_v38 = vmax.f32 %v1109_v34, %v1004_v31  ;;  %v1038_v62 = vadd.f32 %v1037_v58, %v1847_v39  ;;  %v1135_v22 = vrot.slane %v1128_v14, %v1134_v23 }
 0x2b7   :  { %v1091_v42 = vmax.f32 %v1090_v59, %v1012_v35  ;;  %v1111_v44 = vmax.f32 %v1110_v38, %v1008_v46 }
 0x2b9   :  { %v1092_v8 = vmax.f32 %v1091_v42, %v1016_v40  ;;  %v1112_v15 = vmax.f32 %v1111_v44, %v1014_v0 }
 0x2bb   :  { %v1113_v55 = vmax.f32 %v1112_v15, %v1018_v45  ;;  %v1093_v20 = vmax.f32 %v1092_v8, %v1022_v52 }
 0x2bd   :  { %v1114_v47 = vmax.f32 %v1113_v55, %v1024_v26  ;;  %v1094_v57 = vmax.f32 %v1093_v20, %v1026_v56 }
 0x2bf   :  { %v1115_v60 = vmax.f32 %v1114_v47, %v1028_v32  ;;  %v1095_v61 = vmax.f32 %v1094_v57, %v1032_v37 }
 0x2c1   :  { %v1116_v49 = vmax.f32 %v1115_v60, %v1034_v53  ;;  %v1096_v63 = vmax.f32 %v1095_v61, %v1036_v48 }
 0x2c3   :  { %v1097_v2 = vrot.slane %v1096_v63, 4  ;;  %v1117_v4 = vmax.f32 %v1116_v49, %v1038_v62 }
 0x2c5   :  { %v1098_v5 = vmax.f32 %v1096_v63, %v1097_v2  ;;  %v1118_v6 = vrot.slane %v1117_v4, 4 }
 0x2c7   :  { %v1099_v7 = vrot.slane %v1098_v5, 2  ;;  %v1119_v1 = vmax.f32 %v1117_v4, %v1118_v6 }
 0x2c9   :  { %v1100_v13 = vmax.f32 %v1098_v5, %v1099_v7  ;;  %v1120_v50 = vrot.slane %v1119_v1, 2 }
 0x2cb   :  { %v1101_v16 = vrot.slane %v1100_v13, 1  ;;  %v1121_v11 = vmax.f32 %v1119_v1, %v1120_v50 }
 0x2cd   :  { %v1122_v18 = vrot.slane %v1121_v11, 1  ;;  %v1102_v19 = vmax.f32 %v1100_v13, %v1101_v16 }
 0x2cf   :  { %v1123_v41 = vmax.f32 %v1121_v11, %v1122_v18 }
 0x2d1   :  { %v1136_v21 = vcombine.low %v1102_v19, %v1123_v41 }
 0x2d3   :  { %v1143_v39 = vrot.slane %v1136_v21, %v1134_v23 }
 0x2d5   :  { %v1148_v24 = vrot.slane %v1143_v39, 7 }
 0x2d7   :  { %v1150_v30 = vsel %vm1149_vm3, %v1148_v24, %v1135_v22 }
 0x2d8   :  { %v1152_v36 = vsel %vm1151_vm4, %v1148_v24, %v1150_v30 }
 0x2d9   :  { %v1154_v25 = vsel %vm1153_vm5, %v1148_v24, %v1152_v36 }
 0x2da   :  { %v1156_v27 = vsel %vm1155_vm6, %v1148_v24, %v1154_v25 }
 0x2db   :  { %1158 = vst [vmem:[#allocation2] sm:$0xf] %v1156_v27 }
 0x2dc   :  { %1445 = shalt.err (!%p1442_p4)
}
 0x2dd   :  { %1168 = dma.vmem_to_hbm [thread:$0]  %s1166_s9, 64, %s1981_s7, [#allocation3]  }
 0x2de   :  { %1454 = dma.done.wait [#allocation3], 64  }
 0x2df   :  { %1455 = vsyncadd [#allocation3], 4294967232 }
 0x2e0   :  { %1172 = vsyncpa [#allocation3], 1 }

</bundles_post_ra>
